<compile_context>
chip_gen: v7x
topology: tpu7x:2x2x1
jax: 0.10.0
libtpu: 0.0.40
codegen_flags: <defaults>
</compile_context>

<pallas_src>
import math
from functools import partial

import jax
import jax.numpy as jnp
from jax.experimental import pallas as pl
from jax.experimental.pallas import tpu as pltpu

EPS = 1e-5


# ----------------------------------------------------------------------------
# Fused Pallas kernel: full forward for one batch-chunk per grid step.
# ----------------------------------------------------------------------------
def _layernorm(v, w, b):
    mu = jnp.mean(v, axis=-1, keepdims=True)
    var = jnp.mean((v - mu) ** 2, axis=-1, keepdims=True)
    return (v - mu) * jax.lax.rsqrt(var + EPS) * w + b


def fused_forward_kernel(x_ref, lns_ref, wqkv_ref, wo_ref, w1_ref, b1_ref,
                         w2_ref, b2_ref, wout_ref, o_ref,
                         *, num_layers, num_heads):
    BC, S, D = x_ref.shape                              # batch-chunk, seq, model
    hd = D // num_heads
    R = BC * S                                          # rows: batch folded in

    x = x_ref[...].reshape(R, D)                        # (R, D) f32 residual

    # Additive causal bias, computed once per grid step (not per head/layer).
    row = jax.lax.broadcasted_iota(jnp.int32, (S, S), 0)
    col = jax.lax.broadcasted_iota(jnp.int32, (S, S), 1)
    causal_bias = jnp.where(row >= col, 0.0, -1e30).astype(jnp.float32)

    def layer_body(l, x):
        ln1 = lns_ref[2 * l]                            # (2, D): [w; b]
        ln2 = lns_ref[2 * l + 1]

        # --- causal self-attention: fused QKV projection (one MXU op) ---
        h = _layernorm(x, ln1[0:1, :], ln1[1:2, :])     # (R, D) f32
        qkv = jnp.dot(h.astype(jnp.bfloat16), wqkv_ref[l],
                      preferred_element_type=jnp.float32)        # (R, 3D)

        # Only the inherently per-(b, h) SxS score/context matmuls stay per head.
        ctx_heads = []
        for hidx in range(num_heads):
            q = qkv[:, hidx * hd:(hidx + 1) * hd].reshape(BC, S, hd)
            k = qkv[:, D + hidx * hd:D + (hidx + 1) * hd].reshape(BC, S, hd)
            v = qkv[:, 2 * D + hidx * hd:2 * D + (hidx + 1) * hd].reshape(BC, S, hd)

            # 1/sqrt(hd) already folded into the Q columns at pack time.
            s = jnp.einsum('bqd,bkd->bqk',
                           q.astype(jnp.bfloat16), k.astype(jnp.bfloat16),
                           preferred_element_type=jnp.float32)   # (BC, S, S)
            s = s + causal_bias[None, :, :]
            s = s - jnp.max(s, axis=-1, keepdims=True)
            p = jnp.exp(s)
            p = p * pl.reciprocal(jnp.sum(p, axis=-1, keepdims=True), approx=True)

            ctx = jnp.einsum('bqk,bkd->bqd',
                             p.astype(jnp.bfloat16), v.astype(jnp.bfloat16),
                             preferred_element_type=jnp.float32)  # (BC, S, hd)
            ctx_heads.append(ctx.reshape(R, hd))

        ctx_all = jnp.concatenate(ctx_heads, axis=-1)             # (R, D)
        att = jnp.dot(ctx_all.astype(jnp.bfloat16), wo_ref[l],
                      preferred_element_type=jnp.float32)         # (R, D)
        x = x + att

        # --- MLP ---
        h2 = _layernorm(x, ln2[0:1, :], ln2[1:2, :])
        ff = jnp.dot(h2.astype(jnp.bfloat16), w1_ref[l],
                     preferred_element_type=jnp.float32) + b1_ref[l]
        # TODO(synk): PyTorch nn.GELU default is exact-erf; tanh approximation
        # used here for robust TPU lowering.
        ff = jax.nn.gelu(ff, approximate=True)
        x = x + jnp.dot(ff.astype(jnp.bfloat16), w2_ref[l],
                        preferred_element_type=jnp.float32) + b2_ref[l]
        return x

    x = jax.lax.fori_loop(0, num_layers, layer_body, x)

    # --- final norm + (lane-dense, vocab-padded) output projection ---
    lnf = lns_ref[2 * num_layers]
    h = _layernorm(x, lnf[0:1, :], lnf[1:2, :])
    out = jnp.dot(h.astype(jnp.bfloat16), wout_ref[...],
                  preferred_element_type=jnp.float32)             # (R, Vp)
    o_ref[...] = out.reshape(BC, S, o_ref.shape[-1]).astype(o_ref.dtype)


# ----------------------------------------------------------------------------
# Wrapper (single pallas_call for the whole network)
# ----------------------------------------------------------------------------
def _const_spec(shape):
    nd = len(shape)
    return pl.BlockSpec(shape, lambda c, _nd=nd: (0,) * _nd)


def run_network(x, p, num_heads):
    B, S, D = x.shape
    L = int(p["wqkv"].shape[0])
    Vp = int(p["w_out"].shape[1])                      # padded vocab (>=128)

    # One grid step per v7x TensorCore (megacore); on v5e/v6e this is just a
    # 2-iteration sequential loop with the weights copied once.
    num_chunks = 2 if (B >= 2 and B % 2 == 0) else 1
    bc = B // num_chunks

    weights = (p["lns"], p["wqkv"], p["wo"], p["w1"], p["b1"],
               p["w2"], p["b2"], p["w_out"])
    in_specs = [pl.BlockSpec((bc, S, D), lambda c: (c, 0, 0))] + \
               [_const_spec(w.shape) for w in weights]

    # VMEM budget derived from the actual resident slab (not hardcoded).
    weight_bytes = sum(int(w.size) * w.dtype.itemsize for w in weights)
    block_bytes = 4 * bc * S * (D + Vp)                # f32 in/out blocks
    vmem_limit = int(min(96 << 20,
                         max(32 << 20,
                             2 * weight_bytes + 4 * block_bytes + (8 << 20))))

    return pl.pallas_call(
        partial(fused_forward_kernel, num_layers=L, num_heads=num_heads),
        out_shape=jax.ShapeDtypeStruct((B, S, Vp), jnp.float32),
        grid_spec=pltpu.PrefetchScalarGridSpec(
            num_scalar_prefetch=0,
            grid=(num_chunks,),
            in_specs=in_specs,
            out_specs=pl.BlockSpec((bc, S, Vp), lambda c: (c, 0, 0)),
        ),
        compiler_params=pltpu.CompilerParams(
            dimension_semantics=("parallel",),
            vmem_limit_bytes=vmem_limit,
        ),
    )(x, *weights)


def speedy_lang_net_forward(x, packed, num_heads,
                            first_acting_token_idx=None,
                            last_acting_token_idx=None):
    """Equivalent of SpeedyLangNet.forward (full-sequence causal path)."""
    # TODO(synk): first/last_acting_token_idx partial-range gating not
    # implemented; only the full-sequence (None, None) path is supported.
    if jnp.issubdtype(x.dtype, jnp.integer):
        # embedding gather: plain-JAX glue, like net_dict['embedding'](x)
        x = jnp.take(packed["embedding"], x, axis=0)   # (B, S, D) f32
    logits_padded = run_network(x, packed, num_heads)  # (B, S, Vp)
    return logits_padded[..., : packed["vocab"]]       # (B, S, V)


# ----------------------------------------------------------------------------
# Parameters: standard ("PyTorch-like") construction + one-time packing
# ----------------------------------------------------------------------------
def make_params(key, vocab, d_model, n_layers, ff_mult=4):
    ff = ff_mult * d_model
    keys = jax.random.split(key, 1 + 6 * n_layers + 1)
    ki = iter(keys)

    def nrm(k, shape, scale=0.02):
        return (scale * jax.random.normal(k, shape)).astype(jnp.float32)

    params = {"embedding": nrm(next(ki), (vocab, d_model)), "attn_layers": []}
    ones_d = jnp.ones((d_model,), jnp.float32)
    zeros_d = jnp.zeros((d_model,), jnp.float32)
    for _ in range(n_layers):
        params["attn_layers"].append({
            "ln1_w": ones_d, "ln1_b": zeros_d,
            "wq": nrm(next(ki), (d_model, d_model)),
            "wk": nrm(next(ki), (d_model, d_model)),
            "wv": nrm(next(ki), (d_model, d_model)),
            "wo": nrm(next(ki), (d_model, d_model)),
            "ln2_w": ones_d, "ln2_b": zeros_d,
            "w1": nrm(next(ki), (d_model, ff)),
            "b1": jnp.zeros((1, ff), jnp.float32),
            "w2": nrm(next(ki), (ff, d_model)),
            "b2": jnp.zeros((1, d_model), jnp.float32),
        })
    params["lnf_w"] = ones_d
    params["lnf_b"] = zeros_d
    params["w_out"] = nrm(next(ki), (d_model, vocab))
    return params


def pack_params(params, num_heads):
    """One-time weight preprocessing into the fused-kernel layout."""
    D = params["embedding"].shape[1]
    hd = D // num_heads
    V = params["w_out"].shape[1]
    Vp = int(max(128, 128 * pl.cdiv(V, 128)))          # lane-dense logits
    scale = 1.0 / math.sqrt(hd)

    lns, wqkv, wo, w1, b1, w2, b2 = [], [], [], [], [], [], []
    for lp in params["attn_layers"]:
        lns.append(jnp.stack([lp["ln1_w"], lp["ln1_b"]]))
        lns.append(jnp.stack([lp["ln2_w"], lp["ln2_b"]]))
        # Fused QKV slab (D, 3D); 1/sqrt(hd) folded into the Q columns.
        # Head h uses columns [h*hd:(h+1)*hd] of each D-wide section.
        wqkv.append(jnp.concatenate(
            [lp["wq"] * scale, lp["wk"], lp["wv"]], axis=1))
        wo.append(lp["wo"])                            # (D, D), rows grouped by head
        w1.append(lp["w1"]); b1.append(lp["b1"])
        w2.append(lp["w2"]); b2.append(lp["b2"])
    lns.append(jnp.stack([params["lnf_w"], params["lnf_b"]]))

    w_out_pad = jnp.zeros((D, Vp), jnp.float32).at[:, :V].set(params["w_out"])

    bf16 = jnp.bfloat16
    return {
        "embedding": params["embedding"],              # (V, D)      f32
        "lns": jnp.stack(lns),                         # (2L+1, 2, D) f32
        "wqkv": jnp.stack(wqkv).astype(bf16),          # (L, D, 3D)  bf16
        "wo": jnp.stack(wo).astype(bf16),              # (L, D, D)   bf16
        "w1": jnp.stack(w1).astype(bf16),              # (L, D, FF)  bf16
        "b1": jnp.stack(b1),                           # (L, 1, FF)  f32
        "w2": jnp.stack(w2).astype(bf16),              # (L, FF, D)  bf16
        "b2": jnp.stack(b2),                           # (L, 1, D)   f32
        "w_out": w_out_pad.astype(bf16),               # (D, Vp)     bf16, zero-padded
        "vocab": V,
    }


# ----------------------------------------------------------------------------
if __name__ == "__main__":
    B, S, D, V = 2, 8, 32, 64
    N_LAYERS, N_HEADS = 2, 2

    key = jax.random.PRNGKey(0)
    k_tok, k_par = jax.random.split(key)

    params = make_params(k_par, vocab=V, d_model=D, n_layers=N_LAYERS)
    packed = pack_params(params, num_heads=N_HEADS)
    tokens = jax.random.randint(k_tok, (B, S), 0, V, dtype=jnp.int32)

    logits = speedy_lang_net_forward(tokens, packed, num_heads=N_HEADS)
    logits = jax.block_until_ready(logits)

    assert logits.shape == (B, S, V) and logits.dtype == jnp.float32
    assert bool(jnp.all(jnp.isfinite(logits)))
    print("KERNEL_OK")
</pallas_src>

<mosaic_0001>
module attributes {stable_mosaic.version = 11 : i64} {
  func.func @fused_forward_kernel(%arg0: i32, %arg1: memref<1x8x32xf32, #tpu.memory_space<vmem>>, %arg2: memref<5x2x32xf32, #tpu.memory_space<vmem>>, %arg3: memref<2x32x96xbf16, #tpu.memory_space<vmem>>, %arg4: memref<2x32x32xbf16, #tpu.memory_space<vmem>>, %arg5: memref<2x32x128xbf16, #tpu.memory_space<vmem>>, %arg6: memref<2x1x128xf32, #tpu.memory_space<vmem>>, %arg7: memref<2x128x32xbf16, #tpu.memory_space<vmem>>, %arg8: memref<2x1x32xf32, #tpu.memory_space<vmem>>, %arg9: memref<32x128xbf16, #tpu.memory_space<vmem>>, %arg10: memref<1x8x128xf32, #tpu.memory_space<vmem>>) attributes {dimension_semantics = [#tpu.dimension_semantics<parallel>], iteration_bounds = array<i64: 2>, scalar_prefetch = 0 : i64, scratch_operands = 0 : i64, tpu.core_type = #tpu.core_type<tc>, window_params = [{transform_indices = @transform_0, window_bounds = array<i64: 1, 8, 32>}, {pipeline_mode = #tpu.pipeline_mode<synchronous>, transform_indices = @transform_1, window_bounds = array<i64: 5, 2, 32>}, {pipeline_mode = #tpu.pipeline_mode<synchronous>, transform_indices = @transform_2, window_bounds = array<i64: 2, 32, 96>}, {pipeline_mode = #tpu.pipeline_mode<synchronous>, transform_indices = @transform_3, window_bounds = array<i64: 2, 32, 32>}, {pipeline_mode = #tpu.pipeline_mode<synchronous>, transform_indices = @transform_4, window_bounds = array<i64: 2, 32, 128>}, {pipeline_mode = #tpu.pipeline_mode<synchronous>, transform_indices = @transform_5, window_bounds = array<i64: 2, 1, 128>}, {pipeline_mode = #tpu.pipeline_mode<synchronous>, transform_indices = @transform_6, window_bounds = array<i64: 2, 128, 32>}, {pipeline_mode = #tpu.pipeline_mode<synchronous>, transform_indices = @transform_7, window_bounds = array<i64: 2, 1, 32>}, {pipeline_mode = #tpu.pipeline_mode<synchronous>, transform_indices = @transform_8, window_bounds = array<i64: 32, 128>}, {transform_indices = @transform_9, window_bounds = array<i64: 1, 8, 128>}]} {
    %c0 = arith.constant 0 : index
    %c0_0 = arith.constant 0 : index
    %c0_1 = arith.constant 0 : index
    %0 = vector.load %arg1[%c0, %c0_0, %c0_1] : memref<1x8x32xf32, #tpu.memory_space<vmem>>, vector<1x8x32xf32>
    %1 = vector.shape_cast %0 : vector<1x8x32xf32> to vector<8x32xf32>
    %2 = tpu.iota {dimensions = array<i32: 0>} : vector<8x8xi32>
    %3 = tpu.iota {dimensions = array<i32: 1>} : vector<8x8xi32>
    %4 = arith.cmpi sge, %2, %3 : vector<8x8xi32>
    %cst = arith.constant 0.000000e+00 : f32
    %cst_2 = arith.constant -1.000000e+30 : f32
    %5 = vector.broadcast %cst : f32 to vector<8x8xf32>
    %6 = vector.broadcast %cst_2 : f32 to vector<8x8xf32>
    %7 = arith.select %4, %5, %6 : vector<8x8xi1>, vector<8x8xf32>
    %c0_i32 = arith.constant 0 : i32
    %c2_i32 = arith.constant 2 : i32
    %8 = arith.addi %c0_i32, %c2_i32 : i32
    %c1_i32 = arith.constant 1 : i32
    %9 = scf.for %arg11 = %c0_i32 to %8 step %c1_i32 iter_args(%arg12 = %1) -> (vector<8x32xf32>)  : i32 {
      %c2_i32_17 = arith.constant 2 : i32
      %41 = arith.muli %c2_i32_17, %arg11 : i32
      %42 = arith.index_cast %41 : i32 to index
      %c0_18 = arith.constant 0 : index
      %c0_19 = arith.constant 0 : index
      %43 = vector.load %arg2[%42, %c0_18, %c0_19] : memref<5x2x32xf32, #tpu.memory_space<vmem>>, vector<1x2x32xf32>
      %44 = vector.shape_cast %43 : vector<1x2x32xf32> to vector<2x32xf32>
      %c2_i32_20 = arith.constant 2 : i32
      %45 = arith.muli %c2_i32_20, %arg11 : i32
      %c1_i32_21 = arith.constant 1 : i32
      %46 = arith.addi %45, %c1_i32_21 : i32
      %47 = arith.index_cast %46 : i32 to index
      %c0_22 = arith.constant 0 : index
      %c0_23 = arith.constant 0 : index
      %48 = vector.load %arg2[%47, %c0_22, %c0_23] : memref<5x2x32xf32, #tpu.memory_space<vmem>>, vector<1x2x32xf32>
      %49 = vector.shape_cast %48 : vector<1x2x32xf32> to vector<2x32xf32>
      %50 = vector.extract_strided_slice %44 {offsets = [0, 0], sizes = [1, 32], strides = [1, 1]} : vector<2x32xf32> to vector<1x32xf32>
      %51 = vector.extract_strided_slice %44 {offsets = [1, 0], sizes = [1, 32], strides = [1, 1]} : vector<2x32xf32> to vector<1x32xf32>
      %cst_24 = arith.constant dense<0.000000e+00> : vector<8xf32>
      %52 = vector.multi_reduction <add>, %arg12, %cst_24 [1] : vector<8x32xf32> to vector<8xf32>
      %53 = vector.shape_cast %52 : vector<8xf32> to vector<8x1xf32>
      %cst_25 = arith.constant 3.200000e+01 : f32
      %54 = vector.broadcast %cst_25 : f32 to vector<8x1xf32>
      %55 = arith.divf %53, %54 : vector<8x1xf32>
      %56 = vector.broadcast %55 : vector<8x1xf32> to vector<8x32xf32>
      %57 = arith.subf %arg12, %56 : vector<8x32xf32>
      %58 = arith.mulf %57, %57 : vector<8x32xf32>
      %cst_26 = arith.constant dense<0.000000e+00> : vector<8xf32>
      %59 = vector.multi_reduction <add>, %58, %cst_26 [1] : vector<8x32xf32> to vector<8xf32>
      %60 = vector.shape_cast %59 : vector<8xf32> to vector<8x1xf32>
      %cst_27 = arith.constant 3.200000e+01 : f32
      %61 = vector.broadcast %cst_27 : f32 to vector<8x1xf32>
      %62 = arith.divf %60, %61 : vector<8x1xf32>
      %63 = vector.broadcast %55 : vector<8x1xf32> to vector<8x32xf32>
      %64 = arith.subf %arg12, %63 : vector<8x32xf32>
      %cst_28 = arith.constant 9.99999974E-6 : f32
      %65 = vector.broadcast %cst_28 : f32 to vector<8x1xf32>
      %66 = arith.addf %62, %65 : vector<8x1xf32>
      %67 = math.rsqrt %66 : vector<8x1xf32>
      %68 = vector.broadcast %67 : vector<8x1xf32> to vector<8x32xf32>
      %69 = arith.mulf %64, %68 : vector<8x32xf32>
      %70 = vector.broadcast %50 : vector<1x32xf32> to vector<8x32xf32>
      %71 = arith.mulf %69, %70 : vector<8x32xf32>
      %72 = vector.broadcast %51 : vector<1x32xf32> to vector<8x32xf32>
      %73 = arith.addf %71, %72 : vector<8x32xf32>
      %74 = arith.truncf %73 : vector<8x32xf32> to vector<8x32xbf16>
      %75 = arith.index_cast %arg11 : i32 to index
      %c0_29 = arith.constant 0 : index
      %c0_30 = arith.constant 0 : index
      %76 = vector.load %arg3[%75, %c0_29, %c0_30] : memref<2x32x96xbf16, #tpu.memory_space<vmem>>, vector<1x32x96xbf16>
      %77 = vector.shape_cast %76 : vector<1x32x96xbf16> to vector<32x96xbf16>
      %cst_31 = arith.constant dense<0.000000e+00> : vector<8x96xf32>
      %78 = tpu.matmul %74, %77, %cst_31 {dimension_numbers = #tpu.dot_dimension_numbers<[1], [0], [0], [1], [0, 0, 1, 1], [], []>} : vector<8x32xbf16>, vector<32x96xbf16>, vector<8x96xf32> -> vector<8x96xf32>
      %79 = vector.extract_strided_slice %78 {offsets = [0, 0], sizes = [8, 16], strides = [1, 1]} : vector<8x96xf32> to vector<8x16xf32>
      %80 = vector.shape_cast %79 : vector<8x16xf32> to vector<1x8x16xf32>
      %81 = vector.extract_strided_slice %78 {offsets = [0, 32], sizes = [8, 16], strides = [1, 1]} : vector<8x96xf32> to vector<8x16xf32>
      %82 = vector.shape_cast %81 : vector<8x16xf32> to vector<1x8x16xf32>
      %83 = vector.extract_strided_slice %78 {offsets = [0, 64], sizes = [8, 16], strides = [1, 1]} : vector<8x96xf32> to vector<8x16xf32>
      %84 = vector.shape_cast %83 : vector<8x16xf32> to vector<1x8x16xf32>
      %85 = arith.truncf %80 : vector<1x8x16xf32> to vector<1x8x16xbf16>
      %86 = arith.truncf %82 : vector<1x8x16xf32> to vector<1x8x16xbf16>
      "tpu.trace_start"() <{level = 10 : i32, message = "bqd,bkd->bqk"}> : () -> ()
      %cst_32 = arith.constant dense<0.000000e+00> : vector<1x8x8xf32>
      %87 = tpu.matmul %85, %86, %cst_32 {dimension_numbers = #tpu.dot_dimension_numbers<[2], [2], [1], [1], [0, 0, 0, 1, 1, 1], [0], [0]>} : vector<1x8x16xbf16>, vector<1x8x16xbf16>, vector<1x8x8xf32> -> vector<1x8x8xf32>
      "tpu.trace_stop"() : () -> ()
      %88 = vector.shape_cast %7 : vector<8x8xf32> to vector<1x8x8xf32>
      %89 = arith.addf %87, %88 : vector<1x8x8xf32>
      %cst_33 = arith.constant dense<0xFF800000> : vector<1x8xf32>
      %90 = vector.multi_reduction <maximumf>, %89, %cst_33 [2] : vector<1x8x8xf32> to vector<1x8xf32>
      %91 = vector.shape_cast %90 : vector<1x8xf32> to vector<1x8x1xf32>
      %92 = vector.broadcast %91 : vector<1x8x1xf32> to vector<1x8x8xf32>
      %93 = arith.subf %89, %92 : vector<1x8x8xf32>
      %94 = math.exp %93 : vector<1x8x8xf32>
      %cst_34 = arith.constant dense<0.000000e+00> : vector<1x8xf32>
      %95 = vector.multi_reduction <add>, %94, %cst_34 [2] : vector<1x8x8xf32> to vector<1x8xf32>
      %96 = vector.shape_cast %95 : vector<1x8xf32> to vector<1x8x1xf32>
      %97 = tpu.reciprocal %96 {approx = true} : vector<1x8x1xf32> -> vector<1x8x1xf32>
      %98 = vector.broadcast %97 : vector<1x8x1xf32> to vector<1x8x8xf32>
      %99 = arith.mulf %94, %98 : vector<1x8x8xf32>
      %100 = arith.truncf %99 : vector<1x8x8xf32> to vector<1x8x8xbf16>
      %101 = arith.truncf %84 : vector<1x8x16xf32> to vector<1x8x16xbf16>
      "tpu.trace_start"() <{level = 10 : i32, message = "bqk,bkd->bqd"}> : () -> ()
      %cst_35 = arith.constant dense<0.000000e+00> : vector<1x8x16xf32>
      %102 = tpu.matmul %100, %101, %cst_35 {dimension_numbers = #tpu.dot_dimension_numbers<[2], [1], [1], [2], [0, 0, 0, 1, 1, 2], [0], [0]>} : vector<1x8x8xbf16>, vector<1x8x16xbf16>, vector<1x8x16xf32> -> vector<1x8x16xf32>
      "tpu.trace_stop"() : () -> ()
      %103 = vector.shape_cast %102 : vector<1x8x16xf32> to vector<8x16xf32>
      %104 = vector.extract_strided_slice %78 {offsets = [0, 16], sizes = [8, 16], strides = [1, 1]} : vector<8x96xf32> to vector<8x16xf32>
      %105 = vector.shape_cast %104 : vector<8x16xf32> to vector<1x8x16xf32>
      %106 = vector.extract_strided_slice %78 {offsets = [0, 48], sizes = [8, 16], strides = [1, 1]} : vector<8x96xf32> to vector<8x16xf32>
      %107 = vector.shape_cast %106 : vector<8x16xf32> to vector<1x8x16xf32>
      %108 = vector.extract_strided_slice %78 {offsets = [0, 80], sizes = [8, 16], strides = [1, 1]} : vector<8x96xf32> to vector<8x16xf32>
      %109 = vector.shape_cast %108 : vector<8x16xf32> to vector<1x8x16xf32>
      %110 = arith.truncf %105 : vector<1x8x16xf32> to vector<1x8x16xbf16>
      %111 = arith.truncf %107 : vector<1x8x16xf32> to vector<1x8x16xbf16>
      "tpu.trace_start"() <{level = 10 : i32, message = "bqd,bkd->bqk"}> : () -> ()
      %cst_36 = arith.constant dense<0.000000e+00> : vector<1x8x8xf32>
      %112 = tpu.matmul %110, %111, %cst_36 {dimension_numbers = #tpu.dot_dimension_numbers<[2], [2], [1], [1], [0, 0, 0, 1, 1, 1], [0], [0]>} : vector<1x8x16xbf16>, vector<1x8x16xbf16>, vector<1x8x8xf32> -> vector<1x8x8xf32>
      "tpu.trace_stop"() : () -> ()
      %113 = vector.shape_cast %7 : vector<8x8xf32> to vector<1x8x8xf32>
      %114 = arith.addf %112, %113 : vector<1x8x8xf32>
      %cst_37 = arith.constant dense<0xFF800000> : vector<1x8xf32>
      %115 = vector.multi_reduction <maximumf>, %114, %cst_37 [2] : vector<1x8x8xf32> to vector<1x8xf32>
      %116 = vector.shape_cast %115 : vector<1x8xf32> to vector<1x8x1xf32>
      %117 = vector.broadcast %116 : vector<1x8x1xf32> to vector<1x8x8xf32>
      %118 = arith.subf %114, %117 : vector<1x8x8xf32>
      %119 = math.exp %118 : vector<1x8x8xf32>
      %cst_38 = arith.constant dense<0.000000e+00> : vector<1x8xf32>
      %120 = vector.multi_reduction <add>, %119, %cst_38 [2] : vector<1x8x8xf32> to vector<1x8xf32>
      %121 = vector.shape_cast %120 : vector<1x8xf32> to vector<1x8x1xf32>
      %122 = tpu.reciprocal %121 {approx = true} : vector<1x8x1xf32> -> vector<1x8x1xf32>
      %123 = vector.broadcast %122 : vector<1x8x1xf32> to vector<1x8x8xf32>
      %124 = arith.mulf %119, %123 : vector<1x8x8xf32>
      %125 = arith.truncf %124 : vector<1x8x8xf32> to vector<1x8x8xbf16>
      %126 = arith.truncf %109 : vector<1x8x16xf32> to vector<1x8x16xbf16>
      "tpu.trace_start"() <{level = 10 : i32, message = "bqk,bkd->bqd"}> : () -> ()
      %cst_39 = arith.constant dense<0.000000e+00> : vector<1x8x16xf32>
      %127 = tpu.matmul %125, %126, %cst_39 {dimension_numbers = #tpu.dot_dimension_numbers<[2], [1], [1], [2], [0, 0, 0, 1, 1, 2], [0], [0]>} : vector<1x8x8xbf16>, vector<1x8x16xbf16>, vector<1x8x16xf32> -> vector<1x8x16xf32>
      "tpu.trace_stop"() : () -> ()
      %128 = vector.shape_cast %127 : vector<1x8x16xf32> to vector<8x16xf32>
      %129 = tpu.concatenate %103, %128 in 1 : vector<8x16xf32>, vector<8x16xf32> -> vector<8x32xf32>
      %130 = arith.truncf %129 : vector<8x32xf32> to vector<8x32xbf16>
      %131 = arith.index_cast %arg11 : i32 to index
      %c0_40 = arith.constant 0 : index
      %c0_41 = arith.constant 0 : index
      %132 = vector.load %arg4[%131, %c0_40, %c0_41] : memref<2x32x32xbf16, #tpu.memory_space<vmem>>, vector<1x32x32xbf16>
      %133 = vector.shape_cast %132 : vector<1x32x32xbf16> to vector<32x32xbf16>
      %cst_42 = arith.constant dense<0.000000e+00> : vector<8x32xf32>
      %134 = tpu.matmul %130, %133, %cst_42 {dimension_numbers = #tpu.dot_dimension_numbers<[1], [0], [0], [1], [0, 0, 1, 1], [], []>} : vector<8x32xbf16>, vector<32x32xbf16>, vector<8x32xf32> -> vector<8x32xf32>
      %135 = arith.addf %arg12, %134 : vector<8x32xf32>
      %136 = vector.extract_strided_slice %49 {offsets = [0, 0], sizes = [1, 32], strides = [1, 1]} : vector<2x32xf32> to vector<1x32xf32>
      %137 = vector.extract_strided_slice %49 {offsets = [1, 0], sizes = [1, 32], strides = [1, 1]} : vector<2x32xf32> to vector<1x32xf32>
      %cst_43 = arith.constant dense<0.000000e+00> : vector<8xf32>
      %138 = vector.multi_reduction <add>, %135, %cst_43 [1] : vector<8x32xf32> to vector<8xf32>
      %139 = vector.shape_cast %138 : vector<8xf32> to vector<8x1xf32>
      %cst_44 = arith.constant 3.200000e+01 : f32
      %140 = vector.broadcast %cst_44 : f32 to vector<8x1xf32>
      %141 = arith.divf %139, %140 : vector<8x1xf32>
      %142 = vector.broadcast %141 : vector<8x1xf32> to vector<8x32xf32>
      %143 = arith.subf %135, %142 : vector<8x32xf32>
      %144 = arith.mulf %143, %143 : vector<8x32xf32>
      %cst_45 = arith.constant dense<0.000000e+00> : vector<8xf32>
      %145 = vector.multi_reduction <add>, %144, %cst_45 [1] : vector<8x32xf32> to vector<8xf32>
      %146 = vector.shape_cast %145 : vector<8xf32> to vector<8x1xf32>
      %cst_46 = arith.constant 3.200000e+01 : f32
      %147 = vector.broadcast %cst_46 : f32 to vector<8x1xf32>
      %148 = arith.divf %146, %147 : vector<8x1xf32>
      %149 = vector.broadcast %141 : vector<8x1xf32> to vector<8x32xf32>
      %150 = arith.subf %135, %149 : vector<8x32xf32>
      %cst_47 = arith.constant 9.99999974E-6 : f32
      %151 = vector.broadcast %cst_47 : f32 to vector<8x1xf32>
      %152 = arith.addf %148, %151 : vector<8x1xf32>
      %153 = math.rsqrt %152 : vector<8x1xf32>
      %154 = vector.broadcast %153 : vector<8x1xf32> to vector<8x32xf32>
      %155 = arith.mulf %150, %154 : vector<8x32xf32>
      %156 = vector.broadcast %136 : vector<1x32xf32> to vector<8x32xf32>
      %157 = arith.mulf %155, %156 : vector<8x32xf32>
      %158 = vector.broadcast %137 : vector<1x32xf32> to vector<8x32xf32>
      %159 = arith.addf %157, %158 : vector<8x32xf32>
      %160 = arith.truncf %159 : vector<8x32xf32> to vector<8x32xbf16>
      %161 = arith.index_cast %arg11 : i32 to index
      %c0_48 = arith.constant 0 : index
      %c0_49 = arith.constant 0 : index
      %162 = vector.load %arg5[%161, %c0_48, %c0_49] : memref<2x32x128xbf16, #tpu.memory_space<vmem>>, vector<1x32x128xbf16>
      %163 = vector.shape_cast %162 : vector<1x32x128xbf16> to vector<32x128xbf16>
      %cst_50 = arith.constant dense<0.000000e+00> : vector<8x128xf32>
      %164 = tpu.matmul %160, %163, %cst_50 {dimension_numbers = #tpu.dot_dimension_numbers<[1], [0], [0], [1], [0, 0, 1, 1], [], []>} : vector<8x32xbf16>, vector<32x128xbf16>, vector<8x128xf32> -> vector<8x128xf32>
      %165 = arith.index_cast %arg11 : i32 to index
      %c0_51 = arith.constant 0 : index
      %c0_52 = arith.constant 0 : index
      %166 = vector.load %arg6[%165, %c0_51, %c0_52] : memref<2x1x128xf32, #tpu.memory_space<vmem>>, vector<1x1x128xf32>
      %167 = vector.shape_cast %166 : vector<1x1x128xf32> to vector<1x128xf32>
      %168 = vector.broadcast %167 : vector<1x128xf32> to vector<8x128xf32>
      %169 = arith.addf %164, %168 : vector<8x128xf32>
      %170 = arith.mulf %169, %169 : vector<8x128xf32>
      %171 = arith.mulf %169, %170 : vector<8x128xf32>
      %cst_53 = arith.constant 4.471500e-02 : f32
      %172 = vector.broadcast %cst_53 : f32 to vector<8x128xf32>
      %173 = arith.mulf %172, %171 : vector<8x128xf32>
      %174 = arith.addf %169, %173 : vector<8x128xf32>
      %cst_54 = arith.constant 0.797884583 : f32
      %175 = vector.broadcast %cst_54 : f32 to vector<8x128xf32>
      %176 = arith.mulf %175, %174 : vector<8x128xf32>
      %177 = math.tanh %176 : vector<8x128xf32>
      %cst_55 = arith.constant 1.000000e+00 : f32
      %178 = vector.broadcast %cst_55 : f32 to vector<8x128xf32>
      %179 = arith.addf %178, %177 : vector<8x128xf32>
      %cst_56 = arith.constant 5.000000e-01 : f32
      %180 = vector.broadcast %cst_56 : f32 to vector<8x128xf32>
      %181 = arith.mulf %180, %179 : vector<8x128xf32>
      %182 = arith.mulf %169, %181 : vector<8x128xf32>
      %183 = arith.truncf %182 : vector<8x128xf32> to vector<8x128xbf16>
      %184 = arith.index_cast %arg11 : i32 to index
      %c0_57 = arith.constant 0 : index
      %c0_58 = arith.constant 0 : index
      %185 = vector.load %arg7[%184, %c0_57, %c0_58] : memref<2x128x32xbf16, #tpu.memory_space<vmem>>, vector<1x128x32xbf16>
      %186 = vector.shape_cast %185 : vector<1x128x32xbf16> to vector<128x32xbf16>
      %cst_59 = arith.constant dense<0.000000e+00> : vector<8x32xf32>
      %187 = tpu.matmul %183, %186, %cst_59 {dimension_numbers = #tpu.dot_dimension_numbers<[1], [0], [0], [1], [0, 0, 1, 1], [], []>} : vector<8x128xbf16>, vector<128x32xbf16>, vector<8x32xf32> -> vector<8x32xf32>
      %188 = arith.addf %135, %187 : vector<8x32xf32>
      %189 = arith.index_cast %arg11 : i32 to index
      %c0_60 = arith.constant 0 : index
      %c0_61 = arith.constant 0 : index
      %190 = vector.load %arg8[%189, %c0_60, %c0_61] : memref<2x1x32xf32, #tpu.memory_space<vmem>>, vector<1x1x32xf32>
      %191 = vector.shape_cast %190 : vector<1x1x32xf32> to vector<1x32xf32>
      %192 = vector.broadcast %191 : vector<1x32xf32> to vector<8x32xf32>
      %193 = arith.addf %188, %192 : vector<8x32xf32>
      scf.yield %193 : vector<8x32xf32>
    }
    %c2_i32_3 = arith.constant 2 : i32
    %c4 = arith.constant 4 : index
    %c0_4 = arith.constant 0 : index
    %c0_5 = arith.constant 0 : index
    %10 = vector.load %arg2[%c4, %c0_4, %c0_5] : memref<5x2x32xf32, #tpu.memory_space<vmem>>, vector<1x2x32xf32>
    %11 = vector.shape_cast %10 : vector<1x2x32xf32> to vector<2x32xf32>
    %12 = vector.extract_strided_slice %11 {offsets = [0, 0], sizes = [1, 32], strides = [1, 1]} : vector<2x32xf32> to vector<1x32xf32>
    %13 = vector.extract_strided_slice %11 {offsets = [1, 0], sizes = [1, 32], strides = [1, 1]} : vector<2x32xf32> to vector<1x32xf32>
    %cst_6 = arith.constant dense<0.000000e+00> : vector<8xf32>
    %14 = vector.multi_reduction <add>, %9, %cst_6 [1] : vector<8x32xf32> to vector<8xf32>
    %15 = vector.shape_cast %14 : vector<8xf32> to vector<8x1xf32>
    %cst_7 = arith.constant 3.200000e+01 : f32
    %16 = vector.broadcast %cst_7 : f32 to vector<8x1xf32>
    %17 = arith.divf %15, %16 : vector<8x1xf32>
    %18 = vector.broadcast %17 : vector<8x1xf32> to vector<8x32xf32>
    %19 = arith.subf %9, %18 : vector<8x32xf32>
    %20 = arith.mulf %19, %19 : vector<8x32xf32>
    %cst_8 = arith.constant dense<0.000000e+00> : vector<8xf32>
    %21 = vector.multi_reduction <add>, %20, %cst_8 [1] : vector<8x32xf32> to vector<8xf32>
    %22 = vector.shape_cast %21 : vector<8xf32> to vector<8x1xf32>
    %cst_9 = arith.constant 3.200000e+01 : f32
    %23 = vector.broadcast %cst_9 : f32 to vector<8x1xf32>
    %24 = arith.divf %22, %23 : vector<8x1xf32>
    %25 = vector.broadcast %17 : vector<8x1xf32> to vector<8x32xf32>
    %26 = arith.subf %9, %25 : vector<8x32xf32>
    %cst_10 = arith.constant 9.99999974E-6 : f32
    %27 = vector.broadcast %cst_10 : f32 to vector<8x1xf32>
    %28 = arith.addf %24, %27 : vector<8x1xf32>
    %29 = math.rsqrt %28 : vector<8x1xf32>
    %30 = vector.broadcast %29 : vector<8x1xf32> to vector<8x32xf32>
    %31 = arith.mulf %26, %30 : vector<8x32xf32>
    %32 = vector.broadcast %12 : vector<1x32xf32> to vector<8x32xf32>
    %33 = arith.mulf %31, %32 : vector<8x32xf32>
    %34 = vector.broadcast %13 : vector<1x32xf32> to vector<8x32xf32>
    %35 = arith.addf %33, %34 : vector<8x32xf32>
    %36 = arith.truncf %35 : vector<8x32xf32> to vector<8x32xbf16>
    %c0_11 = arith.constant 0 : index
    %c0_12 = arith.constant 0 : index
    %37 = vector.load %arg9[%c0_11, %c0_12] : memref<32x128xbf16, #tpu.memory_space<vmem>>, vector<32x128xbf16>
    %cst_13 = arith.constant dense<0.000000e+00> : vector<8x128xf32>
    %38 = tpu.matmul %36, %37, %cst_13 {dimension_numbers = #tpu.dot_dimension_numbers<[1], [0], [0], [1], [0, 0, 1, 1], [], []>} : vector<8x32xbf16>, vector<32x128xbf16>, vector<8x128xf32> -> vector<8x128xf32>
    %39 = vector.shape_cast %38 : vector<8x128xf32> to vector<1x8x128xf32>
    %c0_14 = arith.constant 0 : index
    %c0_15 = arith.constant 0 : index
    %c0_16 = arith.constant 0 : index
    %40 = vector.load %arg10[%c0_14, %c0_15, %c0_16] : memref<1x8x128xf32, #tpu.memory_space<vmem>>, vector<1x8x128xf32>
    tpu.vector_store %arg10[%c0_14, %c0_15, %c0_16], %39 {strides = array<i32>} : memref<1x8x128xf32, #tpu.memory_space<vmem>>, vector<1x8x128xf32>,
    return
  }
  func.func @transform_0(%arg0: i32) -> (i32, i32, i32) {
    %c0_i32 = arith.constant 0 : i32
    %c0_i32_0 = arith.constant 0 : i32
    %c0_i32_1 = arith.constant 0 : i32
    return %arg0, %c0_i32, %c0_i32_0 : i32, i32, i32
  }
  func.func @transform_1(%arg0: i32) -> (i32, i32, i32) {
    %c0_i32 = arith.constant 0 : i32
    %c0_i32_0 = arith.constant 0 : i32
    %c0_i32_1 = arith.constant 0 : i32
    %c0_i32_2 = arith.constant 0 : i32
    return %c0_i32, %c0_i32_0, %c0_i32_1 : i32, i32, i32
  }
  func.func @transform_2(%arg0: i32) -> (i32, i32, i32) {
    %c0_i32 = arith.constant 0 : i32
    %c0_i32_0 = arith.constant 0 : i32
    %c0_i32_1 = arith.constant 0 : i32
    %c0_i32_2 = arith.constant 0 : i32
    return %c0_i32, %c0_i32_0, %c0_i32_1 : i32, i32, i32
  }
  func.func @transform_3(%arg0: i32) -> (i32, i32, i32) {
    %c0_i32 = arith.constant 0 : i32
    %c0_i32_0 = arith.constant 0 : i32
    %c0_i32_1 = arith.constant 0 : i32
    %c0_i32_2 = arith.constant 0 : i32
    return %c0_i32, %c0_i32_0, %c0_i32_1 : i32, i32, i32
  }
  func.func @transform_4(%arg0: i32) -> (i32, i32, i32) {
    %c0_i32 = arith.constant 0 : i32
    %c0_i32_0 = arith.constant 0 : i32
    %c0_i32_1 = arith.constant 0 : i32
    %c0_i32_2 = arith.constant 0 : i32
    return %c0_i32, %c0_i32_0, %c0_i32_1 : i32, i32, i32
  }
  func.func @transform_5(%arg0: i32) -> (i32, i32, i32) {
    %c0_i32 = arith.constant 0 : i32
    %c0_i32_0 = arith.constant 0 : i32
    %c0_i32_1 = arith.constant 0 : i32
    %c0_i32_2 = arith.constant 0 : i32
    return %c0_i32, %c0_i32_0, %c0_i32_1 : i32, i32, i32
  }
  func.func @transform_6(%arg0: i32) -> (i32, i32, i32) {
    %c0_i32 = arith.constant 0 : i32
    %c0_i32_0 = arith.constant 0 : i32
    %c0_i32_1 = arith.constant 0 : i32
    %c0_i32_2 = arith.constant 0 : i32
    return %c0_i32, %c0_i32_0, %c0_i32_1 : i32, i32, i32
  }
  func.func @transform_7(%arg0: i32) -> (i32, i32, i32) {
    %c0_i32 = arith.constant 0 : i32
    %c0_i32_0 = arith.constant 0 : i32
    %c0_i32_1 = arith.constant 0 : i32
    %c0_i32_2 = arith.constant 0 : i32
    return %c0_i32, %c0_i32_0, %c0_i32_1 : i32, i32, i32
  }
  func.func @transform_8(%arg0: i32) -> (i32, i32) {
    %c0_i32 = arith.constant 0 : i32
    %c0_i32_0 = arith.constant 0 : i32
    %c0_i32_1 = arith.constant 0 : i32
    return %c0_i32, %c0_i32_0 : i32, i32
  }
  func.func @transform_9(%arg0: i32) -> (i32, i32, i32) {
    %c0_i32 = arith.constant 0 : i32
    %c0_i32_0 = arith.constant 0 : i32
    %c0_i32_1 = arith.constant 0 : i32
    return %arg0, %c0_i32, %c0_i32_0 : i32, i32, i32
  }
}

</mosaic_0001>

<bundles_post_ra>
// kernel: tpu_custom_call.1
= control target key start
LH: loop header
LB: loop body
LE: loop exit
PB: predicated region body
PF: predicated region fallthrough
CT: control target
= control target key end

     0   :  { %s1805_s0 = inlined_call_operand.vmem [shape: f32[2,8,32], index: 0, kind: input, shape index: {}]   ;;  %s1806_s1 = inlined_call_operand.vmem [shape: f32[5,2,32], index: 1, kind: input, shape index: {}]   ;;  %s1807_s2 = inlined_call_operand.vmem [shape: bf16[2,32,96], index: 2, kind: input, shape index: {}]   ;;  %s1808_s3 = inlined_call_operand.vmem [shape: bf16[2,32,32], index: 3, kind: input, shape index: {}]   ;;  %s1809_s4 = inlined_call_operand.vmem [shape: bf16[2,32,128], index: 4, kind: input, shape index: {}]   ;;  %s1810_s5 = inlined_call_operand.vmem [shape: f32[2,1,128], index: 5, kind: input, shape index: {}]   ;;  %s1811_s6 = inlined_call_operand.vmem [shape: bf16[2,128,32], index: 6, kind: input, shape index: {}]   ;;  %s1812_s7 = inlined_call_operand.vmem [shape: f32[2,1,32], index: 7, kind: input, shape index: {}]   ;;  %s1813_s8 = inlined_call_operand.vmem [shape: bf16[32,128], index: 8, kind: input, shape index: {}]   ;;  %s1814_s9 = inlined_call_operand.hbm [shape: f32[2,8,128], index: 9, kind: output, shape index: {}]  }
   0x1   :  { %1817 = sst [smem:[#allocation7_spill]] %s1805_s0 }
   0x2   :  { %14 = vsyncpa [#allocation3], 0 }
   0x3   :  { %16 = vsyncpa [#allocation3 + $0x1], 0  ;;  %s1534_s30 = smov 0   ;;  %s1536_s10 = smov 0  }
   0x4   :  { %s1538_s11 = smov 0   ;;  %s1540_s12 = smov 0  }
   0x5 LB: > { %1818 = sst [smem:[#allocation5_spill]] %s1458_s11  ;;  %s1555_s13 = sadd.s32 4294967295, %s1462_s12   ;;  %s1462_s12 = sphi %s1540_s12, %s1831_s12   ;;  %s1458_s11 = sphi %s1538_s11, %s1828_s11   ;;  %s1454_s10 = sphi %s1536_s10, %s1830_s10   ;;  %s1450_s30 = sphi %s1534_s30, %s1829_s30  }
   0x6   : > { %s1135_s14 = sadd.s32 4294967294, %s1462_s12   ;;  %s1559_s15 = sadd.s32 1, %s1462_s12  }
   0x7   : > { %s223_s16 = sadd.s32 1, %s1458_s11  ;;  %s220_s17 = ssub.s32 %s1462_s12, %s1559_s15 }
   0x8   : > { %p233_p0 = scmp.ne.s32.totalorder %s1458_s11, %s1454_s10  ;;  %p221_p1 = scmp.eq.s32.totalorder %s220_s17, 0 }
   0x9   : > { %p234_p2 = scmp.eq.s32.totalorder %s1555_s13, 1  ;;  %p239_p3 = scmp.ne.s32.totalorder %s1454_s10, %s1450_s30 }
   0xa   : > { %p240_p4 = scmp.eq.s32.totalorder %s1135_s14, 1  ;;  %p1138_p7 = scmp.ge.s32.totalorder %s1462_s12, 1 }
   0xb   : > { %s1570_s18 = scalar_select %p221_p1, %s1458_s11, %s223_s16  }
   0xc   : > { %p1572_p5 = por %p234_p2, %p233_p0  ;;  %p1576_p6 = por %p240_p4, %p239_p3 }
   0xd   : > { %1819 = sst [smem:[#allocation6_spill]] %s1570_s18  ;;  %p289_p8 = scmp.lt.s32.totalorder %s1462_s12, 3 }
   0xf   : > { %p290_p9 = pnand %p1138_p7, %p289_p8 }
  0x10   : > { %s1815_s21 = sand.u32 (!%p290_p9), 1, %s1454_s10   ;;  %p324_p10 = scmp.lt.s32.totalorder (!%p290_p9), %s1555_s13, 1  ;;  %v330_v0 = vlaneseq (!%p290_p9)  ;;  %v1472_v3 = vmov (!%p290_p9), -1e+30  }
  0x11   : > { %293 = sbr.rel (%p290_p9) target bundleno = 3080 (0xc08), region = 56  ;;  %s1586_s22 = sshll.u32 (!%p290_p9), %s1815_s21, 3 }
  0x12   : > { %v1588_v1 = vshrl.u32 (!%p290_p9), %v330_v0, 7  ;;  %v333_v2 = vand.u32 (!%p290_p9), 127, %v330_v0  ;;  %s1822_s0 = sld [smem:[#allocation7_spill]] (!%p290_p9)  ;;  %s1600_s29 = smov (!%p290_p9), 0  }
  0x14   : > { %vm334_vm0 = vcmp.ge.s32.totalorder (!%p290_p9), %v1588_v1, %v333_v2 }
  0x15   : > { %v1592_v4 = vsel (!%p290_p9), %vm334_vm0, 0.0, %v1472_v3 }
  0x18   : > { %s325_s23 = scalar_select %p324_p10, %s1555_s13, 1 }
  0x1a   : > { %s1140_s24 = sshll.u32 %s325_s23, 3 }
  0x1b   : > { %s327_s27 = scalar_lea.vmem %s1822_s0, %s1140_s24 }
  0x1c   : > { %v329_v5 = vld [vmem:[%s327_s27] sm:$0xff]  }
  0x1d LB: >> { %vm351_vm1 = vcmask 261120   ;;  %v1473_v12 = vmov 0.0   ;;  %vm1474_vm2 = vmmov 0   ;;  %s1185_s14 = sshll.u32 %s1470_s29, 4  ;;  %s1188_s27 = sshll.u32 %s1470_s29, 6  ;;  %v1647_v16 = vsub.s32 0, %v1588_v1  ;;  %s1470_s29 = sphi %s1600_s29, %s341_s29   ;;  %v1466_v5 = vphi %v329_v5, %v1823_v5  }
  0x1e   : >> { %v352_v6 = vsel %vm351_vm1, %v1466_v5, 0.0  ;;  %1218 = vmatprep.subr.bf16.mxu0 %v1473_v12  ;;  %1222 = vmatprep.mubr.msk.bf16.mxu0 %vm1474_vm2, %v1473_v12  ;;  %s379_s23 = scalar_lea.vmem %s1807_s2, %s1185_s14  ;;  %s1625_s26 = scalar_lea.vmem %s1808_s3, %s1185_s14  ;;  %v1650_v17 = vsub.s32 1, %v1588_v1  ;;  %vm443_vm3 = vcmask 130048   ;;  %vm490_vm4 = vcmask 64512  }
  0x1f   : >> { %353 = vadd.xlane.f32.xlu0 %v352_v6  ;;  %1238 = vmatprep.subr.bf16.mxu1 %v1473_v12  ;;  %v1360_v13 = vld [vmem:[%s379_s23] sm:$0xff]   ;;  %v1361_v14 = vld [vmem:[%s379_s23 + $0x8] sm:$0xff]   ;;  %s1631_s0 = scalar_lea.vmem %s1809_s4, %s1185_s14  ;;  %s1637_s16 = scalar_lea.vmem %s1811_s6, %s1188_s27  ;;  %vm508_vm5 = vcmask 1043456  }
  0x20   : >> { %1240 = vmatprep.mubr.msk.bf16.mxu1 %vm1474_vm2, %v1473_v12  ;;  %1219 = vmatpush3.bf16.msra.mxu0 %v1360_v13  ;;  %s1183_s17 = sshll.u32 %s1470_s29, 2  ;;  %s1475_s11 = smov 112  }
  0x21   : >> { %1220 = vmatprep.subr.bf16.mxu0 %v1473_v12  ;;  %s345_s23 = scalar_lea.vmem %s1806_s1, %s1183_s17  ;;  %s1476_s18 = smov 96  }
  0x22   : >> { %v1644_v15 = vld [vmem:[%s345_s23 + $0x2] sm:$0x3]  ;;  %v346_v23 = vld [vmem:[%s345_s23] sm:$0x3]  ;;  %s1477_s21 = smov 80   ;;  %s1478_s28 = smov 48  }
  0x23   : >> { %v746_v18 = vrot.slane %v1644_v15, %v1647_v16  ;;  %v751_v19 = vrot.slane %v1644_v15, %v1650_v17  ;;  %v369_v24 = vrot.slane %v346_v23, %v1647_v16  ;;  %v374_v27 = vrot.slane %v346_v23, %v1650_v17  ;;  %s1479_s14 = smov 64   ;;  %s1480_s27 = smov 16   ;;  %v1369_v15 = vld [vmem:[%s1637_s16 + $0x18] sm:$0xff]  }
  0x24   : >> { %1221 = vmatpush3.bf16.msra.mxu0 %v1361_v14  ;;  %s760_s17 = scalar_lea.vmem %s1810_s5, %s1470_s29  ;;  %s941_s25 = scalar_lea.vmem %s1812_s7, %s1470_s29 }
  0x25   : >> { %1226 = vmatprep.subr.bf16.mxu0 %v1473_v12  ;;  %s341_s29 = sadd.s32 1, %s1470_s29  }
  0x26   : >> { %p338_p11 = scmp.ge.s32.totalorder %s341_s29, 2  }
  0x27   : > { %vm1482_vm6 = vmmov (%p338_p11), 0   ;;  %v1389_v1 = vld [vmem:[%s1813_s8 + $0x8] sm:$0xff] (%p338_p11)  }
  0xac   : >> { %v354_v7 = vpop.xlane.xlu0 %353 }
  0xad   : >> { %v356_v8 = vmul.f32 0.03125, %v354_v7 }
  0xaf   : >> { %v357_v9 = vsub.f32 %v1466_v5, %v356_v8 }
  0xb1   : >> { %v358_v10 = vmul.f32 %v357_v9, %v357_v9 }
  0xb3   : >> { %v359_v11 = vsel %vm351_vm1, %v358_v10, 0.0 }
  0xb4   : >> { %360 = vadd.xlane.f32.xlu0 %v359_v11 }
 0x141   : >> { %v361_v20 = vpop.xlane.xlu0 %360 }
 0x142   : >> { %v362_v21 = vmul.f32 0.03125, %v361_v20  ;;  %v1362_v20 = vld [vmem:[%s1625_s26] sm:$0xff]  }
 0x144   : >> { %v363_v22 = vadd.f32 1e-05, %v362_v21  ;;  %v1363_v21 = vld [vmem:[%s1625_s26 + $0x8] sm:$0xff]  }
 0x146   : >> { %1374 = vrsqrt.f32 %v363_v22 }
 0x150   : >> { %v1375_v25 = vpop.eup %1374 }
 0x151   : >> { %v365_v26 = vmul.f32 %v1375_v25, %v357_v9 }
 0x153   : >> { %v370_v28 = vmul.f32 %v369_v24, %v365_v26 }
 0x155   : >> { %v375_v29 = vadd.f32 %v374_v27, %v370_v28 }
 0x157   : >> { %v376_v30 = vpack.c.bf16 %v375_v29, %v375_v29 }
 0x159   : >> { %1223 = vmatmul.mubr.msk.bf16.vlgmr.msra.gmra.mrb[0].mxu0 %vm351_vm1, %v376_v30 }
 0x15a   : >> { %1228 = vmatprep.mubr.msk.bf16.mxu0 %vm1474_vm2, %v1473_v12 }
 0x22c   : >> { %v433_v31 = vpop.f32.mrb[0].mxu0 }
 0x22d   : >> { %v439_v32 = vpack.c.bf16 %v433_v31, %v433_v31  ;;  %v1224_v33 = vpop.f32.mrb[1].mxu0 }
 0x22e   : >> { %v436_v34 = vpop.f32.mrb[2].mxu0 }
 0x22f   : >> { %552 = vrot.lane.b32.xlu0 %v439_v32, %s1475_s11  ;;  %441 = vrot.lane.b32.xlu1 %v439_v32, %s1476_s18  ;;  %v1225_v35 = vpop.f32.mrb[3].mxu0  ;;  %s1483_s11 = smov (%p338_p11), [#allocation2]  }
 0x230   : > { %s1396_s29 = sshll.u32 (%p338_p11), %s1483_s11, 4  ;;  %s1397_s29 = int_to_ptr.vmem [resolvable:$false] %s1396_s29 }
 0x231   : > { %s1398_s18 = scalar_lea.vmem (%p338_p11), %s1397_s29, 256 }
 0x233   : >> { %554 = vrot.lane.b32.xlu1 %v439_v32, %s1477_s21 }
 0x2a1   : >> { %v442_v36 = vpop.permute.xlu1 %441  ;;  %v553_v40 = vpop.permute.xlu0 %552 }
 0x2a2   : >> { %v448_v37 = vsel %vm443_vm3, %v442_v36, 0 }
 0x2a3   : >> { %1227 = vmatpush3.bf16.xpose.msra.mxu0 %v448_v37 }
 0x2a4   : >> { %1232 = vmatprep.subr.bf16.mxu0 %v1473_v12 }
 0x2a5   : >> { %v555_v38 = vpop.permute.xlu1 %554 }
 0x2a6   : >> { %v560_v39 = vsel %vm443_vm3, %v555_v38, 0 }
 0x2a7   : >> { %1239 = vmatpush3.bf16.xpose.msra.mxu1 %v560_v39 }
 0x2a8   : >> { %1250 = vmatprep.subr.bf16.mxu1 %v1473_v12 }
 0x2aa   : >> { %1229 = vmatmul.mubr.msk.bf16.vlgmr.msra.gmra.mrb[4].mxu0 %vm443_vm3, %v439_v32 }
 0x2ab   : >> { %1234 = vmatprep.mubr.msk.bf16.mxu0 %vm1474_vm2, %v1473_v12 }
 0x2ae   : >> { %1241 = vmatmul.mubr.msk.bf16.vlgmr.msra.gmra.mrb[0].mxu1 %vm443_vm3, %v553_v40 }
 0x2af   : >> { %1254 = vmatprep.mubr.msk.bf16.mxu1 %vm1474_vm2, %v1473_v12  ;;  %1251 = vmatpush3.bf16.msra.mxu1 %v1362_v20 }
 0x2b0   : >> { %1252 = vmatprep.subr.bf16.mxu1 %v1473_v12 }
 0x2b3   : >> { %1253 = vmatpush3.bf16.msra.mxu1 %v1363_v21 }
 0x2b4   : >> { %1266 = vmatprep.subr.bf16.mxu1 %v1473_v12 }
 0x37d   : >> { %v484_v41 = vpop.f32.mrb[4].mxu0 }
 0x37e   : >> { %v485_v42 = vadd.f32 %v484_v41, %v1592_v4  ;;  %v1230_v43 = vpop.f32.mrb[5].mxu0 }
 0x37f   : >> { %v487_v44 = vpop.f32.mrb[6].mxu0 }
 0x380   : >> { %v1231_v45 = vpop.f32.mrb[7].mxu0  ;;  %v491_v46 = vsel %vm490_vm4, %v485_v42, -inf  ;;  %v1364_v44 = vld [vmem:[%s1631_s0] sm:$0xff]  }
 0x381   : >> { %v596_v47 = vpop.f32.mrb[0].mxu1  ;;  %492 = vmax.xlane.f32.xlu1 %v491_v46 }
 0x382   : >> { %v597_v48 = vadd.f32 %v596_v47, %v1592_v4  ;;  %v1242_v49 = vpop.f32.mrb[1].mxu1 }
 0x383   : >> { %v599_v50 = vpop.f32.mrb[2].mxu1 }
 0x384   : >> { %v1243_v51 = vpop.f32.mrb[3].mxu1  ;;  %v602_v52 = vsel %vm490_vm4, %v597_v48, -inf }
 0x385   : >> { %603 = vmax.xlane.f32.xlu0 %v602_v52 }
 0x39b   : >> { %614 = vrot.lane.b32.xlu0 %v439_v32, %s1478_s28 }
 0x40e   : >> { %v493_v53 = vpop.xlane.xlu1 %492 }
 0x40f   : >> { %v494_v54 = vsub.f32 %v485_v42, %v493_v53  ;;  %v1366_v53 = vld [vmem:[%s1637_s16] sm:$0xff]  }
 0x411   : >> { %v495_v55 = vmul.f32 1.442695, %v494_v54  ;;  %v1367_v54 = vld [vmem:[%s1637_s16 + $0x8] sm:$0xff]  }
 0x412   : >> { %v604_v56 = vpop.xlane.xlu0 %603 }
 0x413   : >> { %1376 = vpow2.f32 %v495_v55  ;;  %v605_v57 = vsub.f32 %v597_v48, %v604_v56  ;;  %v1368_v55 = vld [vmem:[%s1637_s16 + $0x10] sm:$0xff]  }
 0x414   : >> { %v1372_v56 = vld [vmem:[%s1637_s16 + $0x30] sm:$0xff]  }
 0x415   : >> { %v606_v58 = vmul.f32 1.442695, %v605_v57  ;;  %v1373_v57 = vld [vmem:[%s1637_s16 + $0x38] sm:$0xff]  }
 0x416   : >> { %v615_v8 = vpop.permute.xlu0 %614 }
 0x417   : >> { %1378 = vpow2.f32 %v606_v58  ;;  %v620_v11 = vsel %vm508_vm5, %v615_v8, 0  ;;  %v1160_v58 = vld [vmem:[%s760_s17] ss:$0 sm:$0xff] }
 0x41d   : >> { %v1377_v59 = vpop.eup %1376 }
 0x41e   : >> { %v497_v60 = vsel %vm490_vm4, %v1377_v59, 0.0 }
 0x41f   : >> { %498 = vadd.xlane.f32.xlu1 %v497_v60 }
 0x421   : >> { %v1379_v61 = vpop.eup %1378 }
 0x422   : >> { %v608_v62 = vsel %vm490_vm4, %v1379_v61, 0.0 }
 0x423   : >> { %609 = vadd.xlane.f32.xlu1 %v608_v62 }
 0x434   : >> { %503 = vrot.lane.b32.xlu1 %v439_v32, %s1479_s14  ;;  %s1180_s14 = sshll.u32 (%p338_p11), %s1555_s13, 7 }
 0x4ac   : >> { %v499_v63 = vpop.xlane.xlu1 %498 }
 0x4ad   : >> { %1380 = vrcp.f32 %v499_v63 }
 0x4b0   : >> { %v610_v0 = vpop.xlane.xlu1 %609 }
 0x4b1   : >> { %1382 = vrcp.f32 %v610_v0 }
 0x4b4   : >> { %v504_v2 = vpop.permute.xlu1 %503 }
 0x4b5   : >> { %v510_v3 = vsel %vm508_vm5, %v504_v2, 0 }
 0x4b6   : >> { %1233 = vmatpush3.bf16.msra.mxu0 %v510_v3 }
 0x4b7   : >> { %v1381_v6 = vpop.eup %1380  ;;  %1244 = vmatprep.subr.bf16.mxu0 %v1473_v12 }
 0x4b8   : >> { %v501_v7 = vmul.f32 %v1381_v6, %v1377_v59 }
 0x4ba   : >> { %v502_v9 = vpack.c.bf16 %v501_v7, %v501_v7 }
 0x4bb   : >> { %v1383_v10 = vpop.eup %1382 }
 0x4bc   : >> { %1235 = vmatmul.mubr.msk.bf16.vlgmr.msra.gmra.mrb[8].mxu0 %vm490_vm4, %v502_v9  ;;  %v612_v13 = vmul.f32 %v1383_v10, %v1379_v61 }
 0x4bd   : >> { %1245 = vmatpush3.bf16.msra.mxu0 %v620_v11  ;;  %1246 = vmatprep.mubr.msk.bf16.mxu0 %vm1474_vm2, %v1473_v12 }
 0x4be   : >> { %1258 = vmatprep.subr.bf16.mxu0 %v1473_v12  ;;  %v613_v14 = vpack.c.bf16 %v612_v13, %v612_v13 }
 0x4c4   : >> { %1247 = vmatmul.mubr.msk.bf16.vlgmr.msra.gmra.mrb[12].mxu0 %vm490_vm4, %v613_v14  ;;  %v1174_v14 = vld [vmem:[%s941_s25] ss:$0 sm:$0xff]  ;;  %s1826_s25 = sand.u32 (%p338_p11), 1, %s1454_s10  }
 0x4c5   : >> { %1262 = vmatprep.mubr.msk.bf16.mxu0 %vm1474_vm2, %v1473_v12  ;;  %1259 = vmatpush3.bf16.msra.mxu0 %v1364_v44  ;;  %s1039_s23 = scalar_lea.sflag (%p338_p11), [#allocation3], %s1826_s25 }
 0x4c6   : >> { %1260 = vmatprep.subr.bf16.mxu0 %v1473_v12 }
 0x58f   : >> { %v546_v22 = vpop.f32.mrb[8].mxu0 }
 0x590   : >> { %v1236_v23 = vpop.f32.mrb[9].mxu0 }
 0x591   : >> { %v549_v24 = vpop.f32.mrb[10].mxu0 }
 0x592   : >> { %v1237_v25 = vpop.f32.mrb[11].mxu0 }
 0x597   : >> { %v656_v26 = vpop.f32.mrb[12].mxu0 }
 0x598   : >> { %663 = vrot.lane.b32.xlu1 %v656_v26, %s1480_s27  ;;  %v1248_v27 = vpop.f32.mrb[13].mxu0  ;;  %s1824_s27 = scalar_lea.vmem (%p338_p11), [#allocation2], %s1586_s22 }
 0x599   : >> { %v659_v28 = vpop.f32.mrb[14].mxu0  ;;  %s1825_s24 = smov (%p338_p11), %s1824_s27 }
 0x59a   : >> { %v1249_v29 = vpop.f32.mrb[15].mxu0 }
 0x60a   : >> { %v664_v30 = vpop.permute.xlu1 %663 }
 0x60b   : >> { %v666_v31 = vsel %vm443_vm3, %v546_v22, %v664_v30 }
 0x60c   : >> { %v667_v32 = vpack.c.bf16 %v666_v31, %v666_v31  ;;  %v1388_v31 = vld [vmem:[%s1813_s8] sm:$0xff] (%p338_p11)  }
 0x60e   : >> { %1255 = vmatmul.mubr.msk.bf16.vlgmr.msra.gmra.mrb[4].mxu1 %vm351_vm1, %v667_v32  ;;  %v1481_v32 = vmov (%p338_p11), 0.0  }
 0x60f   : >> { %1282 = vmatprep.mubr.msk.bf16.mxu1 %vm1474_vm2, %v1473_v12  ;;  %1267 = vmatpush3.bf16.msra.mxu1 %v1366_v53 }
 0x610   : >> { %1268 = vmatprep.subr.bf16.mxu1 %v1473_v12 }
 0x613   : >> { %1269 = vmatpush3.bf16.msra.mxu1 %v1367_v54 }
 0x614   : >> { %1270 = vmatprep.subr.bf16.mxu1 %v1473_v12 }
 0x617   : >> { %1271 = vmatpush3.bf16.msra.mxu1 %v1368_v55 }
 0x618   : >> { %1272 = vmatprep.subr.bf16.mxu1 %v1473_v12 }
 0x61b   : >> { %1273 = vmatpush3.bf16.msra.mxu1 %v1369_v15 }
 0x61c   : >> { %1274 = vmatprep.subr.bf16.mxu1 %v1473_v12 }
 0x6e1   : >> { %v723_v33 = vpop.f32.mrb[4].mxu1 }
 0x6e2   : >> { %v1694_v34 = vadd.f32 %v1466_v5, %v723_v33  ;;  %v1256_v35 = vpop.f32.mrb[5].mxu1  ;;  %v1365_v5 = vld [vmem:[%s1631_s0 + $0x8] sm:$0xff]   ;;  %s1052_s0 = sshll.u32 (%p338_p11), %s1824_s27, 4  ;;  %s1761_s0 = int_to_ptr.vmem [resolvable:$true] %s1052_s0 }
 0x6e3   : >> { %v726_v36 = vpop.f32.mrb[6].mxu1  ;;  %1261 = vmatpush3.bf16.msra.mxu0 %v1365_v5  ;;  %v1175_v35 = vld [vmem:[%s1806_s1 + $0x8] sm:$0x3] (%p338_p11)  ;;  %s1392_s13 = scalar_lea.vmem (%p338_p11), %s1761_s0, 128  ;;  %p1399_p1 = scmp.lt.s32.totalorder (%p338_p11), %s1761_s0, %s1397_s29 }
 0x6e4   : >> { %v1257_v37 = vpop.f32.mrb[7].mxu1  ;;  %v730_v38 = vsel %vm351_vm1, %v1694_v34, 0.0  ;;  %1286 = vmatprep.subr.bf16.mxu0 (%p338_p11), %v1481_v32  ;;  %v970_v36 = vrot.slane (%p338_p11), %v1175_v35, %v1647_v16  ;;  %p1393_p12 = scmp.ne.s32.totalorder (%p338_p11), %s1761_s0, %s1392_s13  ;;  %p1400_p2 = scmp.lt.s32.totalorder (%p338_p11), %s1398_s18, %s1392_s13 }
 0x6e5   : >> { %731 = vadd.xlane.f32.xlu1 %v730_v38 }
 0x6e6   : > { %p1394_p13 = pnand (%p338_p11), %p1393_p12, %p1572_p5  ;;  %p1401_p3 = por (%p338_p11), %p1400_p2, %p1399_p1 }
 0x6e8   : > { %p1395_p0 = pneg (%p338_p11), %p1394_p13 }
 0x6ea   : > { %p1402_p4 = pnand (%p338_p11), %p1401_p3, %p1395_p0 }
 0x772   : >> { %v732_v39 = vpop.xlane.xlu1 %731 }
 0x773   : >> { %v733_v40 = vmul.f32 0.03125, %v732_v39  ;;  %v975_v39 = vrot.slane (%p338_p11), %v1175_v35, %v1650_v17 }
 0x775   : >> { %v734_v41 = vsub.f32 %v1694_v34, %v733_v40 }
 0x777   : >> { %v735_v42 = vmul.f32 %v734_v41, %v734_v41 }
 0x779   : >> { %v736_v43 = vsel %vm351_vm1, %v735_v42, 0.0 }
 0x77a   : >> { %737 = vadd.xlane.f32.xlu0 %v736_v43 }
 0x807   : >> { %v738_v45 = vpop.xlane.xlu0 %737 }
 0x808   : >> { %v739_v46 = vmul.f32 0.03125, %v738_v45 }
 0x80a   : >> { %v740_v47 = vadd.f32 1e-05, %v739_v46 }
 0x80c   : >> { %1384 = vrsqrt.f32 %v740_v47 }
 0x816   : >> { %v1385_v48 = vpop.eup %1384 }
 0x817   : >> { %v742_v49 = vmul.f32 %v1385_v48, %v734_v41 }
 0x819   : >> { %v747_v50 = vmul.f32 %v746_v18, %v742_v49  ;;  %v1370_v18 = vld [vmem:[%s1637_s16 + $0x20] sm:$0xff]  }
 0x81a   : >> { %1275 = vmatpush3.bf16.msra.mxu1 %v1370_v18 }
 0x81b   : >> { %v752_v51 = vadd.f32 %v751_v19, %v747_v50  ;;  %v1371_v19 = vld [vmem:[%s1637_s16 + $0x28] sm:$0xff]   ;;  %1276 = vmatprep.subr.bf16.mxu1 %v1473_v12  ;;  %s1759_s16 = scalar_lea.hbm (%p338_p11), %s1814_s9, %s1180_s14 }
 0x81d   : >> { %v753_v52 = vpack.c.bf16 %v752_v51, %v752_v51 }
 0x81e   : >> { %1277 = vmatpush3.bf16.msra.mxu1 %v1371_v19 }
 0x81f   : >> { %1263 = vmatmul.mubr.msk.bf16.vlgmr.msra.gmra.mrb[16].mxu0 %vm351_vm1, %v753_v52  ;;  %1278 = vmatprep.subr.bf16.mxu1 %v1473_v12 }
 0x820   : > { %1290 = vmatprep.mubr.msk.bf16.mxu0 (%p338_p11), %vm1482_vm6, %v1481_v32  ;;  %1287 = vmatpush3.bf16.msra.mxu0 (%p338_p11), %v1388_v31 }
 0x821   : > { %1288 = vmatprep.subr.bf16.mxu0 (%p338_p11), %v1481_v32 }
 0x822   : >> { %1279 = vmatpush3.bf16.msra.mxu1 %v1372_v56 }
 0x823   : >> { %1280 = vmatprep.subr.bf16.mxu1 %v1473_v12 }
 0x824   : > { %1289 = vmatpush3.bf16.msra.mxu0 (%p338_p11), %v1389_v1 }
 0x826   : >> { %1281 = vmatpush3.bf16.msra.mxu1 %v1373_v57 }
 0x8f2   : >> { %v817_v59 = vpop.f32.mrb[16].mxu0 }
 0x8f3   : >> { %v818_v60 = vadd.f32 %v1160_v58, %v817_v59  ;;  %v1264_v61 = vpop.f32.mrb[17].mxu0 }
 0x8f4   : >> { %v820_v62 = vpop.f32.mrb[18].mxu0 }
 0x8f5   : >> { %v823_v63 = vmul.f32 %v818_v60, %v818_v60  ;;  %v1265_v0 = vpop.f32.mrb[19].mxu0 }
 0x8f7   : >> { %v824_v2 = vmul.f32 %v823_v63, %v818_v60 }
 0x8f9   : >> { %v825_v3 = vmul.f32 0.044715, %v824_v2 }
 0x8fb   : >> { %v826_v6 = vadd.f32 %v825_v3, %v818_v60 }
 0x8fd   : >> { %v827_v7 = vmul.f32 0.7978846, %v826_v6 }
 0x8ff   : >> { %1386 = vtanh.f32 %v827_v7 }
 0x909   : >> { %v1387_v8 = vpop.eup %1386 }
 0x90a   : >> { %v829_v12 = vadd.f32 1.0, %v1387_v8 }
 0x90c   : >> { %v830_v9 = vmul.f32 0.5, %v829_v12 }
 0x90e   : >> { %v831_v10 = vmul.f32 %v830_v9, %v818_v60 }
 0x910   : >> { %v832_v11 = vpack.c.bf16 %v831_v10, %v831_v10 }
 0x912   : >> { %1283 = vmatmul.mubr.bf16.vlgmr.msra.gmra.mrb[8].mxu1 %v832_v11 }
 0x9e4   : > { %340 = sbr.rel (!%p338_p11) target bundleno = 29 (0x1d), region = 107 }
 0x9e5   : >> { %v934_v13 = vpop.f32.mrb[8].mxu1 }
 0x9e6   : >> { %v940_v20 = vadd.f32 %v934_v13, %v1694_v34  ;;  %v1284_v21 = vpop.f32.mrb[9].mxu1 }
 0x9e7   : >> { %v937_v22 = vpop.f32.mrb[10].mxu1 }
 0x9e8   : >> { %v949_v23 = vadd.f32 %v1174_v14, %v940_v20   ;;  %v1285_v24 = vpop.f32.mrb[11].mxu1 }
 0x9ea   : >> { %v1823_v5 = vmov %v949_v23  ;;  %v953_v25 = vsel (%p338_p11), %vm351_vm1, %v949_v23, 0.0 }
 0x9eb   : > { %954 = vadd.xlane.f32.xlu0 %v953_v25 }
 0xa78   : > { %v955_v26 = vpop.xlane.xlu0 %954 }
 0xa79   : > { %v957_v27 = vmul.f32 0.03125, %v955_v26 }
 0xa7b   : > { %v958_v28 = vsub.f32 %v949_v23, %v957_v27 }
 0xa7d   : > { %v959_v29 = vmul.f32 %v958_v28, %v958_v28 }
 0xa7f   : > { %v960_v30 = vsel %vm351_vm1, %v959_v29, 0.0 }
 0xa80   : > { %961 = vadd.xlane.f32.xlu0 %v960_v30 }
 0xb0d   : > { %v962_v4 = vpop.xlane.xlu0 %961 }
 0xb0e   : > { %v963_v33 = vmul.f32 0.03125, %v962_v4 }
 0xb10   : > { %v964_v34 = vadd.f32 1e-05, %v963_v33 }
 0xb12   : > { %1390 = vrsqrt.f32 %v964_v34 }
 0xb1c   : > { %v1391_v37 = vpop.eup %1390 }
 0xb1d   : > { %v966_v38 = vmul.f32 %v1391_v37, %v958_v28 }
 0xb1f   : > { %v971_v40 = vmul.f32 %v970_v36, %v966_v38 }
 0xb21   : > { %v976_v41 = vadd.f32 %v975_v39, %v971_v40 }
 0xb23   : > { %v977_v42 = vpack.c.bf16 %v976_v41, %v976_v41 }
 0xb25   : > { %1291 = vmatmul.mubr.msk.bf16.vlgmr.msra.gmra.mrb[0].mxu0 %vm351_vm1, %v977_v42 }
 0xbf8   : > { %v1031_v16 = vpop.f32.mrb[0].mxu0 }
 0xbf9   : > { %1037 = vst [vmem:[%s1825_s24] sm:$0xff] %v1031_v16  ;;  %v1292_v17 = vpop.f32.mrb[1].mxu0 }
 0xbfa   : > { %v1034_v43 = vpop.f32.mrb[2].mxu0 }
 0xbfb   : > { %1405 = shalt.err (!%p1402_p4)
}
 0xbfc   : > { %s1406_s22 = scalar_lea.hbm %s1759_s16, 128  ;;  %s1410_s14 = scalar_lea.hbm %s1814_s9, 256 }
 0xbfd   : > { %p1407_p7 = scmp.ne.s32.totalorder %s1759_s16, %s1406_s22  ;;  %p1411_p10 = scmp.lt.u32.totalorder %s1759_s16, %s1814_s9 }
 0xbfe   : > { %p1412_p11 = scmp.lt.u32.totalorder %s1410_s14, %s1406_s22  ;;  %p1414_p13 = scmp.lt.u32.totalorder %s1406_s22, %s1759_s16 }
 0xbff   : > { %p1408_p8 = pnand %p1407_p7, %p1572_p5 }
 0xc00   : > { %p1413_p12 = por %p1412_p11, %p1411_p10 }
 0xc01   : > { %p1409_p9 = pneg %p1408_p8 }
 0xc02   : > { %p1415_p0 = por %p1414_p13, %p1413_p12 }
 0xc04   : > { %p1416_p1 = pnand %p1415_p0, %p1409_p9 }
 0xc06   : > { %1419 = shalt.err (!%p1416_p1)
}
 0xc07   : > { %1294 = dma.vmem_to_hbm [thread:$0]  (%p1572_p5), %s1761_s0, 128, %s1759_s16, %s1039_s23   ;;  %v1293_v44 = vpop.f32.mrb[3].mxu0 }
 0xc08 PF: > { %p1300_p2 = scmp.ge.s32.totalorder %s1462_s12, 2  ;;  %s1064_s17 = sand.u32 1, %s1450_s30  }
 0xc09   : > { %s1065_s24 = scalar_lea.sflag [#allocation3], %s1064_s17 }
 0xc0a   : > { %p1297_p3 = pnand %p1300_p2, %p1576_p6 }
 0xc0c   : > { %1445 = dma.done.wait (!%p1297_p3), %s1065_s24, 128  }
 0xc0d   : > { %1447 = vsyncadd (!%p1297_p3), %s1065_s24, 4294967168  ;;  %s1827_s25 = sld [smem:[#allocation5_spill]]  ;;  %s1828_s11 = sld [smem:[#allocation6_spill]] }
 0xc0e   : > { %p19_p4 = scmp.ge.s32.totalorder %s1559_s15, 4   ;;  %s1829_s30 = smov %s1454_s10 }
 0xc0f   : > { %s1831_s12 = smov %s1559_s15 }
 0xc10   :  { %21 = sbr.rel (!%p19_p4) target bundleno = 5 (0x5), region = 118 }
 0xc13   : > { %s1830_s10 = smov %s1827_s25 }
 0xc17   :  { %1070 = vsyncpa [#allocation3], 1 }
 0xc18   :  { %1072 = vsyncpa [#allocation3 + $0x1], 1 }

</bundles_post_ra>
